<compile_context>
chip_gen: v7x
topology: tpu7x:2x2x1
jax: 0.10.0
libtpu: 0.0.40
codegen_flags: <defaults>
</compile_context>

<pallas_src>
import functools

import jax
import jax.numpy as jnp
from jax import lax
from jax.experimental import pallas as pl
from jax.experimental.pallas import tpu as pltpu

_SUBLANE = 8
_LANE = 128

# Deterministic "weights" from SobelFilter.__init__ (kernel_size=3):
#   kernel_x = W.T @ X = [[-1,-2,-1],[0,0,0],[1,2,1]],  kernel_y = kernel_x.T
KX = ((-1.0, -2.0, -1.0),
      ( 0.0,  0.0,  0.0),
      ( 1.0,  2.0,  1.0))
KY = ((-1.0,  0.0,  1.0),
      (-2.0,  0.0,  2.0),
      (-1.0,  0.0,  1.0))


def _round_up(v, m):
    return (v + m - 1) // m * m


def _vmem_capacity_bytes():
    """Physical VMEM per TensorCore (v5e/v6e: 128 MiB, v7x: 64 MiB)."""
    try:
        cap = int(getattr(pltpu.get_tpu_info(), "vmem_capacity_bytes", 0))
        if cap > 0:
            return cap
    except Exception:
        pass
    return 64 * 1024 * 1024  # conservative fallback (v7x per-core size)


def _sobel_block(p, *, use_roll):
    """Separable 3x3 Sobel with replication padding on a (nb, H, W) block.

    Returns 0.5 * (|conv(kernel_x)| + |conv(kernel_y)|).  No mixing across the
    leading (image) axis, so junk rows of a partial block stay contained.
    """
    _, h, w = p.shape

    if use_roll:
        # In-vreg XLU rotates + edge fix-up (block is lane/sublane aligned).
        # Positive static shifts only.
        col = lax.broadcasted_iota(jnp.int32, p.shape, 2)
        row = lax.broadcasted_iota(jnp.int32, p.shape, 1)

        def left(a):    # a[:, :, j-1], edge-replicated
            return jnp.where(col == 0, a, pltpu.roll(a, 1, 2))

        def right(a):   # a[:, :, j+1], edge-replicated
            return jnp.where(col == w - 1, a, pltpu.roll(a, w - 1, 2))

        def up(a):      # a[:, i-1, :], edge-replicated
            return jnp.where(row == 0, a, pltpu.roll(a, 1, 1))

        def down(a):    # a[:, i+1, :], edge-replicated
            return jnp.where(row == h - 1, a, pltpu.roll(a, h - 1, 1))
    else:
        # Known-good fallback for lane/sublane misaligned blocks.
        def left(a):
            return jnp.concatenate([a[:, :, :1], a[:, :, :-1]], axis=2)

        def right(a):
            return jnp.concatenate([a[:, :, 1:], a[:, :, -1:]], axis=2)

        def up(a):
            return jnp.concatenate([a[:, :1, :], a[:, :-1, :]], axis=1)

        def down(a):
            return jnp.concatenate([a[:, 1:, :], a[:, -1:, :]], axis=1)

    l, r = left(p), right(p)
    h_s = l + 2.0 * p + r                  # [1, 2, 1] horizontally
    h_d = r - l                            # [-1, 0, 1] horizontally
    sx = down(h_s) - up(h_s)               # [-1, 0, 1] vertically == conv(kernel_x)
    sy = up(h_d) + 2.0 * h_d + down(h_d)   # [ 1, 2, 1] vertically == conv(kernel_y)
    return 0.5 * (jnp.abs(sx) + jnp.abs(sy))


def _block_hw_max(sob, n, last_n, rem):
    """(nb, H, W) -> (H, W) max over only the images really in the batch.

    `rem` (static) is the number of valid images in the LAST block; for other
    blocks the whole block is valid.  Pure VPU maxima (no cross-lane work).
    """
    full = jnp.max(sob, axis=0)
    if rem == sob.shape[0]:        # static: no partial last block
        return full
    part = jnp.max(sob[:rem], axis=0)
    return jnp.where(n == last_n, part, full)


# --------------------------- cached (2-pass) path ---------------------------

def _sobel_cached_kernel(x_ref, out_ref, sob_ref, max_ref, gmax_ref, *,
                         nb, rem, use_roll):
    phase = pl.program_id(0)
    n = pl.program_id(1)
    last_n = pl.num_programs(1) - 1

    @pl.when(phase == 0)
    def _():
        sob = _sobel_block(x_ref[...], use_roll=use_roll)
        sob_ref[pl.ds(n * nb, nb)] = sob

        @pl.when(n == 0)
        def _():
            max_ref[...] = jnp.zeros_like(max_ref)
        # Running max kept as a full (H, W) slab: per block this is pure VPU
        # elementwise work; the cross-lane reduce happens once, in phase 1.
        max_ref[...] = jnp.maximum(max_ref[...],
                                   _block_hw_max(sob, n, last_n, rem))

    @pl.when(phase == 1)
    def _():
        @pl.when(n == 0)
        def _():
            gmax_ref[...] = jnp.max(max_ref[...], keepdims=True)
        # Exact divide so an all-zero input gives Inf/NaN, same as PyTorch.
        scale = 2.0 / gmax_ref[0, 0]
        out_ref[...] = sob_ref[pl.ds(n * nb, nb)] * scale - 1.0


# ------------------------- recompute (3-pass) path --------------------------

def _sobel_blockmax_kernel(x_ref, bmax_ref, *, rem, use_roll):
    n = pl.program_id(0)
    last_n = pl.num_programs(0) - 1
    sob = _sobel_block(x_ref[...], use_roll=use_roll)
    m = jnp.max(_block_hw_max(sob, n, last_n, rem))   # scalar block max
    bmax_ref[...] = jnp.full(bmax_ref.shape, m, jnp.float32)


def _sobel_normalize_kernel(gmax_ref, x_ref, out_ref, *, use_roll):
    scale = 2.0 / gmax_ref[0, 0]   # exact divide (all-zero input -> Inf/NaN)
    out_ref[...] = _sobel_block(x_ref[...], use_roll=use_roll) * scale - 1.0


# --------------------------------- wrapper ----------------------------------

def one_sobel_filter(x, *, force_recompute=False, block_images=None):
    """Pallas-TPU forward of OneSobelFilter: (N, 1, H, W) -> (N, 1, H, W) f32."""
    N, C, H, W = x.shape
    assert C == 1, "SobelFilter's conv weight has 1 input channel"
    x3 = x.astype(jnp.float32).reshape(N, H, W)

    # ---- Block sizing: ~4 MiB of HBM traffic per grid step (keeps the
    # ~0.35 us fixed step overhead negligible even at v7x bandwidth), with a
    # cap on the tile-padded VMEM footprint.  A partial last block is allowed.
    raw_img_bytes = H * W * 4
    pad_img_bytes = _round_up(H, _SUBLANE) * _round_up(W, _LANE) * 4
    if block_images is not None:
        nb = int(max(1, min(N, block_images)))
    else:
        nb = min(N,
                 max(1, (4 << 20) // raw_img_bytes),   # ~4 MiB HBM per step
                 max(1, (8 << 20) // pad_img_bytes))   # <=8 MiB padded in VMEM
    n_blocks = int(pl.cdiv(N, nb))
    rem = N - (n_blocks - 1) * nb          # images in the last (maybe partial) block
    n_pad = n_blocks * nb

    # In-vreg XLU rotates for the stencil when the block is lane/sublane
    # aligned; otherwise the concatenate form.
    use_roll = (W % _LANE == 0) and (H % _SUBLANE == 0)

    # ---- Generation-aware VMEM budgeting (v5e/v6e 128 MiB, v7x 64 MiB),
    # computed from tile-padded footprints.
    vmem_cap = _vmem_capacity_bytes()
    block_pad_bytes = nb * pad_img_bytes
    sob_scratch_bytes = n_pad * pad_img_bytes          # persistent sobel cache
    aux_scratch_bytes = pad_img_bytes + 4096           # (H, W) max slab + gmax
    pipeline_bytes = 4 * block_pad_bytes               # double-buffered in+out
    headroom = 8 << 20
    cache_sob = (not force_recompute) and (
        sob_scratch_bytes + aux_scratch_bytes + pipeline_bytes + headroom
        <= vmem_cap)

    need = pipeline_bytes + aux_scratch_bytes + (4 << 20)
    if cache_sob:
        need += sob_scratch_bytes
    vmem_limit = int(min(vmem_cap, max(32 << 20, need)))

    out_shape = jax.ShapeDtypeStruct((N, H, W), jnp.float32)
    flops = 16 * N * H * W

    if cache_sob:
        # Fused 2-phase kernel: 2 HBM passes; sequential grid (running max +
        # persistent scratch).
        out = pl.pallas_call(
            functools.partial(_sobel_cached_kernel, nb=nb, rem=rem,
                              use_roll=use_roll),
            out_shape=out_shape,
            grid=(2, n_blocks),
            in_specs=[
                # phase 0: walk the blocks; phase 1: stay pinned on the block
                # already resident at the end of phase 0 (no wasted DMA).
                pl.BlockSpec(
                    (nb, H, W),
                    lambda p, n: (n * (1 - p) + (n_blocks - 1) * p, 0, 0)),
            ],
            # During phase 0 the output pins (and never writes) block 0; it is
            # properly rewritten at phase 1, n == 0, so any spurious writeback
            # at the phase boundary is benign.
            out_specs=pl.BlockSpec((nb, H, W), lambda p, n: (n * p, 0, 0)),
            scratch_shapes=[
                pltpu.VMEM((n_pad, H, W), jnp.float32),  # un-normalized sobel
                pltpu.VMEM((H, W), jnp.float32),         # running max slab
                pltpu.VMEM((1, 1), jnp.float32),         # global max scalar
            ],
            compiler_params=pltpu.CompilerParams(
                dimension_semantics=("arbitrary", "arbitrary"),
                vmem_limit_bytes=vmem_limit),
            cost_estimate=pl.CostEstimate(
                flops=flops, transcendentals=0,
                bytes_accessed=2 * N * raw_img_bytes),
        )(x3)
    else:
        # Fallback: two "parallel" pallas_calls (3 HBM passes) so both v7x
        # TensorCores can be used; per-block maxima combined on the host side.
        bmax = pl.pallas_call(
            functools.partial(_sobel_blockmax_kernel, rem=rem,
                              use_roll=use_roll),
            out_shape=jax.ShapeDtypeStruct((n_blocks, _SUBLANE, _LANE),
                                           jnp.float32),
            grid=(n_blocks,),
            in_specs=[pl.BlockSpec((nb, H, W), lambda n: (n, 0, 0))],
            out_specs=pl.BlockSpec((1, _SUBLANE, _LANE), lambda n: (n, 0, 0)),
            compiler_params=pltpu.CompilerParams(
                dimension_semantics=("parallel",),
                vmem_limit_bytes=vmem_limit),
            cost_estimate=pl.CostEstimate(
                flops=flops, transcendentals=0,
                bytes_accessed=N * raw_img_bytes + n_blocks * 4096),
        )(x3)
        gmax = jnp.max(bmax).reshape(1, 1)

        out = pl.pallas_call(
            functools.partial(_sobel_normalize_kernel, use_roll=use_roll),
            out_shape=out_shape,
            grid=(n_blocks,),
            in_specs=[pl.BlockSpec((1, 1), lambda n: (0, 0)),
                      pl.BlockSpec((nb, H, W), lambda n: (n, 0, 0))],
            out_specs=pl.BlockSpec((nb, H, W), lambda n: (n, 0, 0)),
            compiler_params=pltpu.CompilerParams(
                dimension_semantics=("parallel",),
                vmem_limit_bytes=vmem_limit),
            cost_estimate=pl.CostEstimate(
                flops=flops, transcendentals=0,
                bytes_accessed=2 * N * raw_img_bytes),
        )(gmax, x3)

    return out.reshape(N, 1, H, W)


# -------------------------------- reference ---------------------------------

def _reference(x):
    """Pure-JAX mirror of the PyTorch forward, for validation."""
    x = x.astype(jnp.float32)
    N, C, H, W = x.shape
    xpad = jnp.pad(x[:, 0], ((0, 0), (1, 1), (1, 1)), mode="edge")
    sx = jnp.zeros((N, H, W), jnp.float32)
    sy = jnp.zeros((N, H, W), jnp.float32)
    for di in range(3):
        for dj in range(3):
            win = xpad[:, di:di + H, dj:dj + W]
            sx = sx + KX[di][dj] * win
            sy = sy + KY[di][dj] * win
    sob = 0.5 * (jnp.abs(sx) + jnp.abs(sy))
    out = (sob / jnp.max(sob) - 0.5) / 0.5
    return out[:, None, :, :]


if __name__ == "__main__":
    k1, k2, k3 = jax.random.split(jax.random.PRNGKey(0), 3)

    x_small = jax.random.uniform(k1, (2, 1, 16, 16), jnp.float32)   # concat stencil
    x_lane = jax.random.uniform(k2, (2, 1, 16, 128), jnp.float32)   # roll stencil
    x_odd = jax.random.uniform(k3, (3, 1, 16, 16), jnp.float32)     # partial block

    cases = [
        (x_small, {}),                                       # cached, concat path
        (x_small, {"force_recompute": True}),                # parallel 2-call fallback
        (x_lane, {}),                                        # cached, roll path
        (x_lane, {"force_recompute": True}),                 # fallback, roll path
        (x_odd, {"block_images": 2}),                        # partial last block (cached)
        (x_odd, {"block_images": 2, "force_recompute": True}),  # partial last block (fallback)
    ]
    for xi, kwargs in cases:
        y = one_sobel_filter(xi, **kwargs)
        jax.block_until_ready(y)
        assert y.shape == xi.shape and y.dtype == jnp.float32, kwargs
        assert jnp.allclose(y, _reference(xi), atol=1e-5, rtol=1e-5), kwargs
    print("KERNEL_OK")
</pallas_src>

<mosaic_0001>
module attributes {stable_mosaic.version = 11 : i64} {
  func.func @_sobel_cached_kernel(%arg0: i32, %arg1: i32, %arg2: memref<2x16x16xf32, #tpu.memory_space<vmem>>, %arg3: memref<2x16x16xf32, #tpu.memory_space<vmem>>, %arg4: memref<2x16x16xf32, #tpu.memory_space<vmem>>, %arg5: memref<16x16xf32, #tpu.memory_space<vmem>>, %arg6: memref<1x1xf32, #tpu.memory_space<vmem>>) attributes {dimension_semantics = [#tpu.dimension_semantics<arbitrary>, #tpu.dimension_semantics<arbitrary>], iteration_bounds = array<i64: 2, 1>, scalar_prefetch = 0 : i64, scratch_operands = 3 : i64, tpu.core_type = #tpu.core_type<tc>, window_params = [{transform_indices = @transform_0, window_bounds = array<i64: 2, 16, 16>}, {transform_indices = @transform_1, window_bounds = array<i64: 2, 16, 16>}]} {
    %c0_i32 = arith.constant 0 : i32
    %0 = arith.cmpi eq, %arg0, %c0_i32 : i32
    %1 = arith.extui %0 : i1 to i32
    %c0_i32_0 = arith.constant 0 : i32
    %2 = arith.cmpi ne, %1, %c0_i32_0 : i32
    scf.if %2 {
      %c0 = arith.constant 0 : index
      %c0_2 = arith.constant 0 : index
      %c0_3 = arith.constant 0 : index
      %6 = vector.load %arg2[%c0, %c0_2, %c0_3] : memref<2x16x16xf32, #tpu.memory_space<vmem>>, vector<2x16x16xf32>
      %7 = vector.extract_strided_slice %6 {offsets = [0, 0, 0], sizes = [2, 16, 1], strides = [1, 1, 1]} : vector<2x16x16xf32> to vector<2x16x1xf32>
      %8 = vector.extract_strided_slice %6 {offsets = [0, 0, 0], sizes = [2, 16, 15], strides = [1, 1, 1]} : vector<2x16x16xf32> to vector<2x16x15xf32>
      %9 = tpu.concatenate %7, %8 in 2 : vector<2x16x1xf32>, vector<2x16x15xf32> -> vector<2x16x16xf32>
      %10 = vector.extract_strided_slice %6 {offsets = [0, 0, 1], sizes = [2, 16, 15], strides = [1, 1, 1]} : vector<2x16x16xf32> to vector<2x16x15xf32>
      %11 = vector.extract_strided_slice %6 {offsets = [0, 0, 15], sizes = [2, 16, 1], strides = [1, 1, 1]} : vector<2x16x16xf32> to vector<2x16x1xf32>
      %12 = tpu.concatenate %10, %11 in 2 : vector<2x16x15xf32>, vector<2x16x1xf32> -> vector<2x16x16xf32>
      %cst = arith.constant 2.000000e+00 : f32
      %13 = vector.broadcast %cst : f32 to vector<2x16x16xf32>
      %14 = arith.mulf %13, %6 : vector<2x16x16xf32>
      %15 = arith.addf %9, %14 : vector<2x16x16xf32>
      %16 = arith.addf %15, %12 : vector<2x16x16xf32>
      %17 = arith.subf %12, %9 : vector<2x16x16xf32>
      %18 = vector.extract_strided_slice %16 {offsets = [0, 1, 0], sizes = [2, 15, 16], strides = [1, 1, 1]} : vector<2x16x16xf32> to vector<2x15x16xf32>
      %19 = vector.extract_strided_slice %16 {offsets = [0, 15, 0], sizes = [2, 1, 16], strides = [1, 1, 1]} : vector<2x16x16xf32> to vector<2x1x16xf32>
      %20 = tpu.concatenate %18, %19 in 1 : vector<2x15x16xf32>, vector<2x1x16xf32> -> vector<2x16x16xf32>
      %21 = vector.extract_strided_slice %16 {offsets = [0, 0, 0], sizes = [2, 1, 16], strides = [1, 1, 1]} : vector<2x16x16xf32> to vector<2x1x16xf32>
      %22 = vector.extract_strided_slice %16 {offsets = [0, 0, 0], sizes = [2, 15, 16], strides = [1, 1, 1]} : vector<2x16x16xf32> to vector<2x15x16xf32>
      %23 = tpu.concatenate %21, %22 in 1 : vector<2x1x16xf32>, vector<2x15x16xf32> -> vector<2x16x16xf32>
      %24 = arith.subf %20, %23 : vector<2x16x16xf32>
      %25 = vector.extract_strided_slice %17 {offsets = [0, 0, 0], sizes = [2, 1, 16], strides = [1, 1, 1]} : vector<2x16x16xf32> to vector<2x1x16xf32>
      %26 = vector.extract_strided_slice %17 {offsets = [0, 0, 0], sizes = [2, 15, 16], strides = [1, 1, 1]} : vector<2x16x16xf32> to vector<2x15x16xf32>
      %27 = tpu.concatenate %25, %26 in 1 : vector<2x1x16xf32>, vector<2x15x16xf32> -> vector<2x16x16xf32>
      %cst_4 = arith.constant 2.000000e+00 : f32
      %28 = vector.broadcast %cst_4 : f32 to vector<2x16x16xf32>
      %29 = arith.mulf %28, %17 : vector<2x16x16xf32>
      %30 = arith.addf %27, %29 : vector<2x16x16xf32>
      %31 = vector.extract_strided_slice %17 {offsets = [0, 1, 0], sizes = [2, 15, 16], strides = [1, 1, 1]} : vector<2x16x16xf32> to vector<2x15x16xf32>
      %32 = vector.extract_strided_slice %17 {offsets = [0, 15, 0], sizes = [2, 1, 16], strides = [1, 1, 1]} : vector<2x16x16xf32> to vector<2x1x16xf32>
      %33 = tpu.concatenate %31, %32 in 1 : vector<2x15x16xf32>, vector<2x1x16xf32> -> vector<2x16x16xf32>
      %34 = arith.addf %30, %33 : vector<2x16x16xf32>
      %35 = math.absf %24 : vector<2x16x16xf32>
      %36 = math.absf %34 : vector<2x16x16xf32>
      %37 = arith.addf %35, %36 : vector<2x16x16xf32>
      %cst_5 = arith.constant 5.000000e-01 : f32
      %38 = vector.broadcast %cst_5 : f32 to vector<2x16x16xf32>
      %39 = arith.mulf %38, %37 : vector<2x16x16xf32>
      %c2_i32 = arith.constant 2 : i32
      %40 = arith.muli %arg1, %c2_i32 : i32
      %41 = arith.index_cast %40 : i32 to index
      %c0_6 = arith.constant 0 : index
      %c0_7 = arith.constant 0 : index
      %42 = vector.load %arg4[%41, %c0_6, %c0_7] : memref<2x16x16xf32, #tpu.memory_space<vmem>>, vector<2x16x16xf32>
      tpu.vector_store %arg4[%41, %c0_6, %c0_7], %39 {strides = array<i32>} : memref<2x16x16xf32, #tpu.memory_space<vmem>>, vector<2x16x16xf32>,
      %c0_i32_8 = arith.constant 0 : i32
      %43 = arith.cmpi eq, %arg1, %c0_i32_8 : i32
      %44 = arith.extui %43 : i1 to i32
      %c0_i32_9 = arith.constant 0 : i32
      %45 = arith.cmpi ne, %44, %c0_i32_9 : i32
      scf.if %45 {
        %cst_15 = arith.constant 0.000000e+00 : f32
        %50 = vector.broadcast %cst_15 : f32 to vector<16x16xf32>
        %c0_16 = arith.constant 0 : index
        %c0_17 = arith.constant 0 : index
        %51 = vector.load %arg5[%c0_16, %c0_17] : memref<16x16xf32, #tpu.memory_space<vmem>>, vector<16x16xf32>
        tpu.vector_store %arg5[%c0_16, %c0_17], %50 {strides = array<i32>} : memref<16x16xf32, #tpu.memory_space<vmem>>, vector<16x16xf32>,
      } else {
      }
      %c0_10 = arith.constant 0 : index
      %c0_11 = arith.constant 0 : index
      %46 = vector.load %arg5[%c0_10, %c0_11] : memref<16x16xf32, #tpu.memory_space<vmem>>, vector<16x16xf32>
      %cst_12 = arith.constant dense<0xFF800000> : vector<16x16xf32>
      %47 = vector.multi_reduction <maximumf>, %39, %cst_12 [0] : vector<2x16x16xf32> to vector<16x16xf32>
      %48 = arith.maximumf %46, %47 : vector<16x16xf32>
      %c0_13 = arith.constant 0 : index
      %c0_14 = arith.constant 0 : index
      %49 = vector.load %arg5[%c0_13, %c0_14] : memref<16x16xf32, #tpu.memory_space<vmem>>, vector<16x16xf32>
      tpu.vector_store %arg5[%c0_13, %c0_14], %48 {strides = array<i32>} : memref<16x16xf32, #tpu.memory_space<vmem>>, vector<16x16xf32>,
    } else {
    }
    %c1_i32 = arith.constant 1 : i32
    %3 = arith.cmpi eq, %arg0, %c1_i32 : i32
    %4 = arith.extui %3 : i1 to i32
    %c0_i32_1 = arith.constant 0 : i32
    %5 = arith.cmpi ne, %4, %c0_i32_1 : i32
    scf.if %5 {
      %c0_i32_2 = arith.constant 0 : i32
      %6 = arith.cmpi eq, %arg1, %c0_i32_2 : i32
      %7 = arith.extui %6 : i1 to i32
      %c0_i32_3 = arith.constant 0 : i32
      %8 = arith.cmpi ne, %7, %c0_i32_3 : i32
      scf.if %8 {
        %c0_11 = arith.constant 0 : index
        %c0_12 = arith.constant 0 : index
        %20 = vector.load %arg5[%c0_11, %c0_12] : memref<16x16xf32, #tpu.memory_space<vmem>>, vector<16x16xf32>
        %21 = vector.shape_cast %20 : vector<16x16xf32> to vector<1x16x16xf32>
        %cst_13 = arith.constant dense<0xFF800000> : vector<1xf32>
        %22 = vector.multi_reduction <maximumf>, %21, %cst_13 [1, 2] : vector<1x16x16xf32> to vector<1xf32>
        %23 = vector.shape_cast %22 : vector<1xf32> to vector<1x1x1xf32>
        %24 = vector.extract %23[0, 0, 0] : f32 from vector<1x1x1xf32>
        %25 = vector.broadcast %24 : f32 to vector<1x1xf32>
        %c0_14 = arith.constant 0 : index
        %c0_15 = arith.constant 0 : index
        %26 = vector.load %arg6[%c0_14, %c0_15] : memref<1x1xf32, #tpu.memory_space<vmem>>, vector<1x1xf32>
        tpu.vector_store %arg6[%c0_14, %c0_15], %25 {strides = array<i32>} : memref<1x1xf32, #tpu.memory_space<vmem>>, vector<1x1xf32>,
      } else {
      }
      %c0 = arith.constant 0 : index
      %c0_4 = arith.constant 0 : index
      %9 = vector.load %arg6[%c0, %c0_4] : memref<1x1xf32, #tpu.memory_space<vmem>>, vector<1x1xf32>
      %10 = vector.extract %9[0, 0] : f32 from vector<1x1xf32>
      %cst = arith.constant 2.000000e+00 : f32
      %11 = arith.divf %cst, %10 : f32
      %c2_i32 = arith.constant 2 : i32
      %12 = arith.muli %arg1, %c2_i32 : i32
      %13 = arith.index_cast %12 : i32 to index
      %c0_5 = arith.constant 0 : index
      %c0_6 = arith.constant 0 : index
      %14 = vector.load %arg4[%13, %c0_5, %c0_6] : memref<2x16x16xf32, #tpu.memory_space<vmem>>, vector<2x16x16xf32>
      %15 = vector.broadcast %11 : f32 to vector<2x16x16xf32>
      %16 = arith.mulf %14, %15 : vector<2x16x16xf32>
      %cst_7 = arith.constant 1.000000e+00 : f32
      %17 = vector.broadcast %cst_7 : f32 to vector<2x16x16xf32>
      %18 = arith.subf %16, %17 : vector<2x16x16xf32>
      %c0_8 = arith.constant 0 : index
      %c0_9 = arith.constant 0 : index
      %c0_10 = arith.constant 0 : index
      %19 = vector.load %arg3[%c0_8, %c0_9, %c0_10] : memref<2x16x16xf32, #tpu.memory_space<vmem>>, vector<2x16x16xf32>
      tpu.vector_store %arg3[%c0_8, %c0_9, %c0_10], %18 {strides = array<i32>} : memref<2x16x16xf32, #tpu.memory_space<vmem>>, vector<2x16x16xf32>,
    } else {
    }
    return
  }
  func.func @transform_0(%arg0: i32, %arg1: i32) -> (i32, i32, i32) {
    %c1_i32 = arith.constant 1 : i32
    %0 = arith.subi %c1_i32, %arg0 : i32
    %1 = arith.muli %arg1, %0 : i32
    %c0_i32 = arith.constant 0 : i32
    %2 = arith.muli %c0_i32, %arg0 : i32
    %3 = arith.addi %1, %2 : i32
    %c0_i32_0 = arith.constant 0 : i32
    %c0_i32_1 = arith.constant 0 : i32
    %c0_i32_2 = arith.constant 0 : i32
    return %3, %c0_i32_0, %c0_i32_1 : i32, i32, i32
  }
  func.func @transform_1(%arg0: i32, %arg1: i32) -> (i32, i32, i32) {
    %0 = arith.muli %arg1, %arg0 : i32
    %c0_i32 = arith.constant 0 : i32
    %c0_i32_0 = arith.constant 0 : i32
    %c0_i32_1 = arith.constant 0 : i32
    return %0, %c0_i32, %c0_i32_0 : i32, i32, i32
  }
}

</mosaic_0001>

<bundles_post_ra>
// kernel: tpu_custom_call.1
= control target key start
LH: loop header
LB: loop body
LE: loop exit
PB: predicated region body
PF: predicated region fallthrough
CT: control target
= control target key end

     0   :  { %6 = vsyncpa [#allocation6], 0  ;;  %s815_s0 = inlined_call_operand.hbm [shape: f32[2,16,16], index: 0, kind: input, shape index: {}]   ;;  %s816_s1 = inlined_call_operand.hbm [shape: f32[2,16,16], index: 1, kind: output, shape index: {}]  }
   0x1   :  { %8 = vsyncpa [#allocation6 + $0x1], 0 }
   0x2   :  { %9 = vsyncpa [#allocation7], 0 }
   0x3   :  { %11 = vsyncpa [#allocation7 + $0x1], 0  ;;  %s678_s6 = smov 0   ;;  %s680_s7 = smov 0  }
   0x4   :  { %s682_s8 = smov 0  }
   0x5 LB: > { %s493_s9 = sadd.s32 4294967295, %s657_s8   ;;  %s494_s10 = sadd.s32 4294967294, %s657_s8   ;;  %s657_s8 = sphi %s682_s8, %s17_s8   ;;  %s653_s7 = sphi %s680_s7, %s822_s7   ;;  %s649_s6 = sphi %s678_s6, %s821_s6  }
   0x6   : > { %s29_s11 = sadd.s32 1, %s653_s7  ;;  %p532_p2 = scmp.lt.s32.totalorder %s657_s8, 2 }
   0x7   : > { %p31_p1 = scmp.ge.s32.totalorder %s29_s11, 2  ;;  %p533_p3 = scmp.eq.s32.totalorder %s657_s8, 0 }
   0x8   : > { %s659_s13 = smov [#allocation5]   ;;  %s573_s17 = scalar_lea.hbm %s815_s0, 512 }
   0x9   : > { %s824_s11 = smov (%p31_p1, %s29_s11), 0  ;;  %p701_p4 = pnand %p533_p3, %p532_p2 }
   0xa   : > { %s119_s14 = sshll.u32 %s659_s13, 4  ;;  %p574_p6 = scmp.ne.s32.totalorder %s815_s0, %s573_s17  ;;  %s120_s14 = int_to_ptr.vmem [resolvable:$true] %s119_s14 }
   0xb   : > { %p575_p7 = pneg %p701_p4  ;;  %p580_p10 = scmp.lt.u32.totalorder %s573_s17, %s815_s0 }
   0xd   : > { %p576_p8 = pnand %p575_p7, %p574_p6 }
   0xf   : > { %p577_p9 = pneg %p576_p8 }
  0x11   : > { %p582_p11 = pnand %p580_p10, %p577_p9 }
  0x13   : > { %585 = shalt.err (!%p582_p11)
}
  0x14   : > { %s586_s22 = scalar_lea.vmem %s120_s14, 512  ;;  %s593_s23 = scalar_lea.vmem %s120_s14, 1024 }
  0x15   : > { %p587_p12 = scmp.ne.s32.totalorder %s120_s14, %s586_s22  ;;  %p594_p2 = scmp.lt.s32.totalorder %s120_s14, %s120_s14 }
  0x16   : > { %p595_p3 = scmp.lt.s32.totalorder %s593_s23, %s586_s22 }
  0x17   : > { %p589_p13 = pnand %p587_p12, %p575_p7 }
  0x18   : > { %p596_p0 = por %p595_p3, %p594_p2 }
  0x19   : > { %p590_p1 = pneg %p589_p13 }
  0x1b   : > { %p597_p5 = pnand %p596_p0, %p590_p1 }
  0x1d   : > { %600 = shalt.err (!%p597_p5)
}
  0x1e   : > { %s660_s24 = smov 128   ;;  %s661_s25 = smov 8  }
  0x1f   : > { %527 = dma.hbm_to_vmem [thread:$0]  (!%p701_p4), %s815_s0, 512, %s120_s14, [#allocation6], %s660_s24, %s660_s24, %s661_s25  }
  0x20   : > { %p127_p6 = scmp.lt.s32.totalorder %s657_s8, 3  ;;  %p818_p8 = scmp.ge.s32.totalorder %s657_s8, 1 }
  0x22   : > { %p128_p7 = pnand %p818_p8, %p127_p6 }
  0x23   : > { %p534_p9 = scmp.eq.s32.totalorder (!%p128_p7), %s493_s9, 0 }
  0x24   : > { %131 = sbr.rel (%p128_p7) target bundleno = 570 (0x23a), region = 24 }
  0x2b   : > { %640 = dma.done.wait (%p534_p9), [#allocation6], 512  }
  0x2c   : > { %642 = vsyncadd (%p534_p9), [#allocation6], 4294966784  ;;  %p500_p0 = scmp.ne.s32.totalorder %s649_s6, 0 }
  0x2d   : > { %v728_v0 = vld [vmem:[#allocation5 + $0x10] sm:$0xff] (!%p500_p0)  ;;  %v165_v1 = vld [vmem:[#allocation5] sm:$0xff] (!%p500_p0)  ;;  %s662_s28 = smov (!%p500_p0), 1   ;;  %v168_v2 = vld [vmem:[#allocation5 + $0x18] sm:$0xff] (!%p500_p0)  ;;  %s663_s29 = smov (!%p500_p0), 127   ;;  %vm316_vm0 = vcmask (!%p500_p0), 130048  }
  0x2e   : > { %164 = sbr.rel (%p500_p0) target bundleno = 202 (0xca), region = 32  ;;  %177 = vrot.lane.b32.xlu1 (!%p500_p0), %v728_v0, %s662_s28  ;;  %173 = vrot.lane.b32.xlu0 (!%p500_p0), %v165_v1, %s662_s28  ;;  %v166_v3 = vld [vmem:[#allocation5 + $0x8] sm:$0xff] (!%p500_p0)  ;;  %v664_v4 = vmov (!%p500_p0), 0.0   ;;  %vm185_vm1 = vcmask (!%p500_p0), 7168   ;;  %v207_v7 = vmul.f32 (!%p500_p0), 2.0, %v165_v1  ;;  %vm202_vm2 = vcmask (!%p500_p0), 121856  }
  0x2f   : > { %325 = vst.msk [vmem:[#allocation3] sm:$0xff] (!%p500_p0), %vm316_vm0, %v664_v4  ;;  %326 = vst.msk [vmem:[#allocation3 + $0x8] sm:$0xff] (!%p500_p0), %vm316_vm0, %v664_v4  ;;  %v208_v9 = vmul.f32 (!%p500_p0), 2.0, %v166_v3  ;;  %v209_v17 = vmul.f32 (!%p500_p0), 2.0, %v728_v0  ;;  %v210_v18 = vmul.f32 (!%p500_p0), 2.0, %v168_v2  ;;  %vm227_vm3 = vcmask (!%p500_p0), 1046528  }
  0x30   : > { %vm240_vm4 = vcmask (!%p500_p0), 1040384  }
  0x32   : > { %179 = vrot.lane.b32.xlu1 (!%p500_p0), %v168_v2, %s662_s28  ;;  %175 = vrot.lane.b32.xlu0 (!%p500_p0), %v166_v3, %s662_s28 }
  0x36   : > { %192 = vrot.lane.b32.xlu1 %v166_v3, %s663_s29  ;;  %190 = vrot.lane.b32.xlu0 %v165_v1, %s663_s29 }
  0x3a   : > { %196 = vrot.lane.b32.xlu1 %v168_v2, %s663_s29  ;;  %194 = vrot.lane.b32.xlu0 %v728_v0, %s663_s29 }
  0xa0   : > { %v178_v5 = vpop.permute.xlu1 %177  ;;  %v174_v6 = vpop.permute.xlu0 %173 }
  0xa1   : > { %v186_v11 = vsel %vm185_vm1, %v165_v1, %v174_v6  ;;  %v188_v25 = vsel %vm185_vm1, %v728_v0, %v178_v5 }
  0xa2   : > { %v211_v13 = vadd.f32 %v207_v7, %v186_v11  ;;  %v213_v49 = vadd.f32 %v209_v17, %v188_v25 }
  0xa4   : > { %v180_v8 = vpop.permute.xlu1 %179  ;;  %v176_v10 = vpop.permute.xlu0 %175 }
  0xa5   : > { %v187_v12 = vsel %vm185_vm1, %v166_v3, %v176_v10  ;;  %v189_v26 = vsel %vm185_vm1, %v168_v2, %v180_v8 }
  0xa6   : > { %v212_v14 = vadd.f32 %v208_v9, %v187_v12  ;;  %v214_v40 = vadd.f32 %v210_v18, %v189_v26 }
  0xa8   : > { %v193_v15 = vpop.permute.xlu1 %192  ;;  %v191_v16 = vpop.permute.xlu0 %190 }
  0xa9   : > { %v204_v19 = vsel %vm202_vm2, %v193_v15, %v166_v3  ;;  %v203_v20 = vsel %vm202_vm2, %v191_v16, %v165_v1 }
  0xaa   : > { %v216_v21 = vadd.f32 %v212_v14, %v204_v19  ;;  %v220_v22 = vsub.f32 %v204_v19, %v187_v12  ;;  %v215_v23 = vadd.f32 %v211_v13, %v203_v20  ;;  %v219_v24 = vsub.f32 %v203_v20, %v186_v11 }
  0xac   : > { %v229_v27 = vrot.slane %v216_v21, 1  ;;  %v242_v28 = vrot.slane %v216_v21, 7  ;;  %v262_v29 = vrot.slane %v220_v22, 7  ;;  %v274_v30 = vmul.f32 2.0, %v220_v22  ;;  %v197_v31 = vpop.permute.xlu1 %196  ;;  %v195_v44 = vpop.permute.xlu0 %194 }
  0xad   : > { %v282_v32 = vrot.slane %v220_v22, 1  ;;  %v228_v33 = vrot.slane %v215_v23, 1  ;;  %v241_v34 = vrot.slane %v215_v23, 7  ;;  %v261_v35 = vrot.slane %v219_v24, 7 }
  0xae   : > { %v238_v36 = vsel %vm227_vm3, %v229_v27, %v216_v21  ;;  %v273_v37 = vmul.f32 2.0, %v219_v24  ;;  %v281_v38 = vrot.slane %v219_v24, 1  ;;  %v206_v39 = vsel %vm202_vm2, %v197_v31, %v168_v2 }
  0xaf   : > { %v230_v41 = vsel %vm227_vm3, %v228_v33, %v229_v27  ;;  %v243_v42 = vsel %vm240_vm4, %v241_v34, %v242_v28  ;;  %v251_v43 = vsel %vm240_vm4, %v215_v23, %v241_v34  ;;  %v263_v47 = vsel %vm240_vm4, %v261_v35, %v262_v29 }
  0xb0   : > { %v253_v45 = vsub.f32 %v230_v41, %v251_v43  ;;  %v254_v46 = vsub.f32 %v238_v36, %v243_v42  ;;  %v271_v48 = vsel %vm240_vm4, %v219_v24, %v261_v35  ;;  %v278_v51 = vadd.f32 %v274_v30, %v263_v47 }
  0xb1   : > { %v277_v50 = vadd.f32 %v273_v37, %v271_v48  ;;  %v218_v52 = vadd.f32 %v214_v40, %v206_v39  ;;  %v291_v53 = vsel %vm227_vm3, %v282_v32, %v220_v22  ;;  %v283_v54 = vsel %vm227_vm3, %v281_v38, %v282_v32  ;;  %v328_v40 = vld [vmem:[#allocation3 + $0x8] sm:$0xff] }
  0xb2   : > { %v222_v55 = vsub.f32 %v206_v39, %v189_v26  ;;  %v205_v56 = vsel %vm202_vm2, %v195_v44, %v728_v0  ;;  %v294_v58 = vadd.f32 %v291_v53, %v278_v51  ;;  %v297_v59 = vand.u32 2147483647, %v253_v45  ;;  %v327_v39 = vld [vmem:[#allocation3] sm:$0xff] }
  0xb3   : > { %v293_v57 = vadd.f32 %v283_v54, %v277_v50  ;;  %v232_v60 = vrot.slane %v218_v52, 1  ;;  %v298_v61 = vand.u32 2147483647, %v254_v46  ;;  %v245_v62 = vrot.slane %v218_v52, 7 }
  0xb4   : > { %v265_v63 = vrot.slane %v222_v55, 7  ;;  %v217_v1 = vadd.f32 %v213_v49, %v205_v56  ;;  %v302_v3 = vand.u32 2147483647, %v294_v58  ;;  %v276_v4 = vmul.f32 2.0, %v222_v55 }
  0xb5   : > { %v301_v2 = vand.u32 2147483647, %v293_v57  ;;  %v221_v5 = vsub.f32 %v205_v56, %v188_v25  ;;  %v239_v6 = vsel %vm227_vm3, %v232_v60, %v218_v52  ;;  %v285_v7 = vrot.slane %v222_v55, 1 }
  0xb6   : > { %v231_v8 = vrot.slane %v217_v1, 1  ;;  %v244_v9 = vrot.slane %v217_v1, 7  ;;  %v306_v11 = vadd.f32 %v302_v3, %v298_v61 }
  0xb7   : > { %v305_v10 = vadd.f32 %v301_v2, %v297_v59  ;;  %v264_v0 = vrot.slane %v221_v5, 7  ;;  %v275_v12 = vmul.f32 2.0, %v221_v5  ;;  %v284_v16 = vrot.slane %v221_v5, 1 }
  0xb8   : > { %v233_v13 = vsel %vm227_vm3, %v231_v8, %v232_v60  ;;  %v246_v14 = vsel %vm240_vm4, %v244_v9, %v245_v62  ;;  %v252_v15 = vsel %vm240_vm4, %v217_v1, %v244_v9  ;;  %v310_v18 = vmul.f32 0.5, %v306_v11 }
  0xb9   : > { %v309_v17 = vmul.f32 0.5, %v305_v10  ;;  %v255_v19 = vsub.f32 %v233_v13, %v252_v15  ;;  %v266_v20 = vsel %vm240_vm4, %v264_v0, %v265_v63  ;;  %v272_v21 = vsel %vm240_vm4, %v221_v5, %v264_v0 }
  0xba   : > { %318 = vst.msk [vmem:[#allocation2 + $0x8] sm:$0xff] %vm316_vm0, %v310_v18  ;;  %v256_v22 = vsub.f32 %v239_v6, %v246_v14  ;;  %v279_v23 = vadd.f32 %v275_v12, %v272_v21  ;;  %v280_v24 = vadd.f32 %v276_v4, %v266_v20  ;;  %v292_v25 = vsel %vm227_vm3, %v285_v7, %v222_v55 }
  0xbb   : > { %317 = vst.msk [vmem:[#allocation2] sm:$0xff] %vm316_vm0, %v309_v17  ;;  %v286_v26 = vsel %vm227_vm3, %v284_v16, %v285_v7  ;;  %v299_v29 = vand.u32 2147483647, %v255_v19  ;;  %v329_v37 = vsel %vm316_vm0, %v309_v17, -inf  ;;  %v332_v38 = vsel %vm316_vm0, %v310_v18, -inf }
  0xbc   : > { %v295_v27 = vadd.f32 %v286_v26, %v279_v23  ;;  %v296_v28 = vadd.f32 %v292_v25, %v280_v24  ;;  %v300_v30 = vand.u32 2147483647, %v256_v22 }
  0xbe   : > { %v303_v31 = vand.u32 2147483647, %v295_v27  ;;  %v304_v32 = vand.u32 2147483647, %v296_v28 }
  0xc0   : > { %v307_v33 = vadd.f32 %v303_v31, %v299_v29  ;;  %v308_v34 = vadd.f32 %v304_v32, %v300_v30 }
  0xc2   : > { %v311_v35 = vmul.f32 0.5, %v307_v33  ;;  %v312_v36 = vmul.f32 0.5, %v308_v34 }
  0xc4   : > { %319 = vst.msk [vmem:[#allocation2 + $0x10] sm:$0xff] %vm316_vm0, %v311_v35  ;;  %320 = vst.msk [vmem:[#allocation2 + $0x18] sm:$0xff] %vm316_vm0, %v312_v36  ;;  %v330_v41 = vsel %vm316_vm0, %v311_v35, -inf  ;;  %v333_v42 = vsel %vm316_vm0, %v312_v36, -inf }
  0xc5   : > { %v331_v43 = vmax.f32 %v329_v37, %v330_v41  ;;  %v334_v44 = vmax.f32 %v332_v38, %v333_v42 }
  0xc7   : > { %v335_v45 = vmax.f32 %v327_v39, %v331_v43  ;;  %v336_v46 = vmax.f32 %v328_v40, %v334_v44 }
  0xc9   : > { %337 = vst.msk [vmem:[#allocation3] sm:$0xff] %vm316_vm0, %v335_v45  ;;  %338 = vst.msk [vmem:[#allocation3 + $0x8] sm:$0xff] %vm316_vm0, %v336_v46 }
  0xca PF: > { %p501_p4 = scmp.ne.s32.totalorder %s649_s6, 1 }
  0xcb   : > { %vm349_vm5 = vcmask (!%p501_p4), 130048   ;;  %vm363_vm6 = vcmask (!%p501_p4), 0   ;;  %v374_v63 = vld [vmem:[#allocation2] sm:$0xff] (!%p501_p4)  ;;  %v375_v1 = vld [vmem:[#allocation2 + $0x8] sm:$0xff] (!%p501_p4)  ;;  %v376_v2 = vld [vmem:[#allocation2 + $0x10] sm:$0xff] (!%p501_p4) }
  0xcc   : > { %342 = sbr.rel (%p501_p4) target bundleno = 546 (0x222), region = 40  ;;  %v377_v3 = vld [vmem:[#allocation2 + $0x18] sm:$0xff] (!%p501_p4) }
  0xd0   : > { %v347_v47 = vld [vmem:[#allocation3] sm:$0xff] (!%p501_p4)  ;;  %v348_v48 = vld [vmem:[#allocation3 + $0x8] sm:$0xff] (!%p501_p4) }
  0xd1   : > { %v350_v49 = vsel (!%p501_p4), %vm349_vm5, %v347_v47, -inf  ;;  %v351_v50 = vsel (!%p501_p4), %vm349_vm5, %v348_v48, -inf }
  0xd2   : > { %v352_v51 = vmax.f32 (!%p501_p4), %v350_v49, %v351_v50 }
  0xd4   : > { %353 = vmax.xlane.f32.xlu0 %v352_v51 }
 0x161   : > { %v354_v52 = vpop.xlane.xlu0 %353 }
 0x162   : > { %v355_v53 = vrot.slane %v354_v52, 4 }
 0x164   : > { %v356_v54 = vmax.f32 %v354_v52, %v355_v53 }
 0x166   : > { %v357_v55 = vrot.slane %v356_v54, 2 }
 0x168   : > { %v358_v56 = vmax.f32 %v356_v54, %v357_v55 }
 0x16a   : > { %v359_v57 = vrot.slane %v358_v56, 1 }
 0x16c   : > { %v360_v58 = vmax.f32 %v358_v56, %v359_v57 }
 0x16e   : > { %510 = vpush %v360_v58 }
 0x19f   : > { %s511_s30 = spop %510 }
 0x1a0   : > { %v362_v59 = vstv %s511_s30 }
 0x1a1   : > { %364 = vst.msk [vmem:[#allocation4] sm:$0x1] %vm363_vm6, %v362_v59 }
 0x1a8   : > { %v365_v60 = vld [vmem:[#allocation4] sm:$0x1] }
 0x1a9   : > { %512 = vpush %v365_v60 }
 0x1da   : > { %s513_s2 = spop %512 }
 0x1db   : > { %v367_v61 = vstv %s513_s2 }
 0x1dc   : > { %571 = vrcp.f32 %v367_v61 }
 0x1e6   : > { %v572_v62 = vpop.eup %571 }
 0x1e7   : > { %514 = vpush %v572_v62 }
 0x218   : > { %s515_s3 = spop %514 }
 0x219   : > { %s370_s4 = smul.f32 2.0, %s515_s3 }
 0x21b   : > { %v378_v4 = vstv %s370_s4 }
 0x21c   : > { %v379_v5 = vmul.f32 %v378_v4, %v374_v63  ;;  %v380_v6 = vmul.f32 %v378_v4, %v375_v1  ;;  %v381_v7 = vmul.f32 %v378_v4, %v376_v2  ;;  %v382_v8 = vmul.f32 %v378_v4, %v377_v3 }
 0x21e   : > { %v502_v9 = vadd.f32 -1.0, %v379_v5  ;;  %v503_v10 = vadd.f32 -1.0, %v380_v6  ;;  %v504_v11 = vadd.f32 -1.0, %v381_v7  ;;  %v505_v0 = vadd.f32 -1.0, %v382_v8 }
 0x220   : > { %388 = vst.msk [vmem:[#allocation8] sm:$0xff] %vm349_vm5, %v502_v9  ;;  %389 = vst.msk [vmem:[#allocation8 + $0x8] sm:$0xff] %vm349_vm5, %v503_v10 }
 0x221   : > { %390 = vst.msk [vmem:[#allocation8 + $0x10] sm:$0xff] %vm349_vm5, %v504_v11  ;;  %391 = vst.msk [vmem:[#allocation8 + $0x18] sm:$0xff] %vm349_vm5, %v505_v0 }
 0x222 PF: > { %p780_p5 = scmp.eq.s32.totalorder %s493_s9, 1  ;;  %s665_s6 = smov [#allocation8]  }
 0x223   : > { %s408_s12 = sshll.u32 %s665_s6, 4  ;;  %s409_s12 = int_to_ptr.vmem [resolvable:$true] %s408_s12 }
 0x224   : > { %s601_s13 = scalar_lea.vmem %s409_s12, 512  ;;  %s607_s14 = scalar_lea.vmem %s409_s12, 1024 }
 0x225   : > { %p602_p10 = scmp.ne.s32.totalorder %s409_s12, %s601_s13  ;;  %p608_p13 = scmp.lt.s32.totalorder %s409_s12, %s409_s12 }
 0x226   : > { %p609_p1 = scmp.lt.s32.totalorder %s607_s14, %s601_s13 }
 0x227   : > { %p603_p11 = pnand %p602_p10, %p780_p5 }
 0x228   : > { %p610_p2 = por %p609_p1, %p608_p13 }
 0x229   : > { %p604_p12 = pneg %p603_p11 }
 0x22b   : > { %p611_p3 = pnand %p610_p2, %p604_p12 }
 0x22d   : > { %614 = shalt.err (!%p611_p3)
}
 0x22e   : > { %s615_s16 = scalar_lea.hbm %s816_s1, 512 }
 0x22f   : > { %p616_p6 = scmp.ne.s32.totalorder %s816_s1, %s615_s16  ;;  %p621_p9 = scmp.lt.u32.totalorder %s615_s16, %s816_s1 }
 0x231   : > { %p617_p8 = pnand %p616_p6, %p780_p5 }
 0x233   : > { %p618_p7 = pneg %p617_p8 }
 0x235   : > { %p623_p0 = pnand %p621_p9, %p618_p7 }
 0x237   : > { %626 = shalt.err (!%p623_p0)
}
 0x238   : > { %s666_s21 = smov 128   ;;  %s667_s22 = smov 8  }
 0x239   : > { %521 = dma.vmem_to_hbm [thread:$0]  (%p780_p5), %s409_s12, 512, %s816_s1, [#allocation7], %s666_s21, %s666_s21, %s667_s22  }
 0x23a PF: > { %p537_p4 = scmp.eq.s32.totalorder %s494_s10, 1  ;;  %p820_p10 = scmp.ge.s32.totalorder %s657_s8, 2 }
 0x23c   : > { %p529_p11 = pnand %p537_p4, %p820_p10 }
 0x23e   : > { %644 = dma.done.wait (!%p529_p11), [#allocation7], 512  }
 0x23f   : > { %646 = vsyncadd (!%p529_p11), [#allocation7], 4294966784  ;;  %s17_s8 = sadd.s32 1, %s657_s8   ;;  %s821_s6 = smov %s653_s7 }
 0x240   : > { %p14_p12 = scmp.ge.s32.totalorder %s17_s8, 4   ;;  %s822_s7 = smov %s824_s11 }
 0x242   :  { %16 = sbr.rel (!%p14_p12) target bundleno = 5 (0x5), region = 87 }
 0x249   :  { %429 = vsyncpa [#allocation6], 1 }
 0x24a   :  { %431 = vsyncpa [#allocation6 + $0x1], 1 }
 0x24b   :  { %432 = vsyncpa [#allocation7], 1 }
 0x24c   :  { %434 = vsyncpa [#allocation7 + $0x1], 1 }

</bundles_post_ra>
